<compile_context>
chip_gen: v7x
topology: tpu7x:2x2x1
jax: 0.10.0
libtpu: 0.0.40
codegen_flags: <defaults>
</compile_context>

<pallas_src>
import functools

import jax
import jax.numpy as jnp
from jax import lax
from jax.experimental import pallas as pl
from jax.experimental.pallas import tpu as pltpu

LANES = 128
SUBLANES = 8


def _round_up(x, m):
    return ((x + m - 1) // m) * m


def _pad2(a, rows, cols):
    r, c = a.shape
    return jnp.pad(a, ((0, rows - r), (0, cols - c)))


# ----------------------------------------------------------------------------
# Fused Pallas kernel: all GCN layers + mean-pool + MLP head, one invocation
# ----------------------------------------------------------------------------
def fused_gcn_kernel(adj_ref, x_ref, w_ref, shift_ref,
                     pool_ref, w1_ref, shift1_ref, w2_ref, b2_ref,
                     o_ref):
    num_layers = w_ref.shape[0]
    adj = adj_ref[...]                                           # (Np, Np) bf16

    # One GCN layer:  h <- relu(Ahat @ (h @ W'_l) + shift'_l)
    def layer(l, h):
        xw = jnp.dot(h, w_ref[l],
                     preferred_element_type=jnp.float32)         # (Np, Dp) f32
        y = jnp.dot(adj, xw.astype(jnp.bfloat16),
                    preferred_element_type=jnp.float32)          # (Np, Dp) f32
        y = y + shift_ref[l]                                     # folded b + BN (f32)
        return jnp.maximum(y, 0.0).astype(jnp.bfloat16)          # ReLU, repack
        # TODO(synk): dropout omitted (identity in eval mode)

    h = lax.fori_loop(0, num_layers, layer, x_ref[...], unroll=True)

    # Head: global_mean_pool as a matmul with the precomputed (Gp, Np) pool
    # matrix, then Linear -> (folded) BN -> ReLU -> Linear, all on-chip.
    pooled = jnp.dot(pool_ref[...], h,
                     preferred_element_type=jnp.float32)         # (Gp, Dp) f32
    hh = jnp.dot(pooled.astype(jnp.bfloat16), w1_ref[...],
                 preferred_element_type=jnp.float32) + shift1_ref[...]
    hh = jnp.maximum(hh, 0.0)
    o_ref[...] = jnp.dot(hh.astype(jnp.bfloat16), w2_ref[...],
                         preferred_element_type=jnp.float32) + b2_ref[...]


def fused_gcn_call(adj_p, x_p, w_stack, shift_stack, pool_p,
                   w1_p, shift1_p, w2_p, b2_p):
    gp = pool_p.shape[0]
    outp = w2_p.shape[1]
    vmem = pl.BlockSpec(memory_space=pltpu.MemorySpace.VMEM)     # fully resident

    return pl.pallas_call(
        fused_gcn_kernel,
        out_shape=jax.ShapeDtypeStruct((gp, outp), jnp.float32),
        in_specs=[vmem] * 9,
        out_specs=vmem,
        compiler_params=pltpu.CompilerParams(
            vmem_limit_bytes=32 * 1024 * 1024),                  # actual use < 1 MiB
    )(adj_p, x_p, w_stack, shift_stack, pool_p, w1_p, shift1_p, w2_p, b2_p)


# ----------------------------------------------------------------------------
# Glue: graph preprocessing + parameter folding (plain JAX)
# ----------------------------------------------------------------------------
def normalized_adjacency(edge_index, num_nodes):
    """Dense D^-1/2 (A + I) D^-1/2 as in PyG's GCNConv normalization."""
    # TODO(synk): dense N x N scatter-add becomes the real bottleneck for
    #             large graphs long before the kernel does.
    src, dst = edge_index[0], edge_index[1]
    a = jnp.zeros((num_nodes, num_nodes), jnp.float32)
    a = a.at[dst, src].add(1.0)                 # message flows src -> dst
    a = a + jnp.eye(num_nodes, dtype=jnp.float32)
    deg = a.sum(axis=1)
    dinv = jnp.where(deg > 0, 1.0 / jnp.sqrt(deg), 0.0)
    return dinv[:, None] * a * dinv[None, :]


def mean_pool_matrix(batch, num_graphs, num_nodes):
    """P with P[g, n] = [batch[n] == g] / |graph g| so P @ X == mean pool."""
    onehot = (batch[None, :] == jnp.arange(num_graphs)[:, None]).astype(jnp.float32)
    counts = jnp.maximum(onehot.sum(axis=1, keepdims=True), 1.0)
    return onehot / counts


def _fold_conv_bn(w, b, bn, eps=1e-5):
    scale = bn["gamma"] * jax.lax.rsqrt(bn["var"] + eps)
    w_fold = w * scale[None, :]
    shift = bn["beta"] + (b - bn["mean"]) * scale
    return w_fold, shift


# ----------------------------------------------------------------------------
# Model
# ----------------------------------------------------------------------------
def init_params(key, num_node_features, hidden_channels, num_layers):
    p = {"convs": [], "bns": []}
    dims = [num_node_features] + [hidden_channels] * num_layers
    for i in range(num_layers):
        key, k1, k2, k3, k4, k5 = jax.random.split(key, 6)
        fan_in, fan_out = dims[i], dims[i + 1]
        p["convs"].append({
            "w": jax.random.normal(k1, (fan_in, fan_out), jnp.float32) * 0.1,
            "b": jax.random.normal(k2, (1, fan_out), jnp.float32) * 0.1,
        })
        p["bns"].append({
            "gamma": 1.0 + 0.1 * jax.random.normal(k3, (fan_out,), jnp.float32),
            "beta": 0.1 * jax.random.normal(k4, (fan_out,), jnp.float32),
            "mean": 0.1 * jax.random.normal(k5, (fan_out,), jnp.float32),
            "var": jnp.ones((fan_out,), jnp.float32),
        })
    h2 = hidden_channels // 2
    key, k1, k2, k3, k4, k5, k6, k7 = jax.random.split(key, 8)
    p["mlp_hidden_w"] = jax.random.normal(k1, (hidden_channels, h2), jnp.float32) * 0.1
    p["mlp_hidden_b"] = jax.random.normal(k2, (1, h2), jnp.float32) * 0.1
    p["bn_head"] = {
        "gamma": 1.0 + 0.1 * jax.random.normal(k3, (h2,), jnp.float32),
        "beta": 0.1 * jax.random.normal(k4, (h2,), jnp.float32),
        "mean": 0.1 * jax.random.normal(k5, (h2,), jnp.float32),
        "var": jnp.ones((h2,), jnp.float32),
    }
    p["mlp_output_w"] = jax.random.normal(k6, (h2, 1), jnp.float32) * 0.1
    p["mlp_output_b"] = jax.random.normal(k7, (1, 1), jnp.float32) * 0.1
    return p


@functools.partial(jax.jit, static_argnames=("num_graphs",))
def gcn_forward(params, x, edge_index, batch, num_graphs):
    num_nodes, num_feats = x.shape
    hidden = params["convs"][0]["w"].shape[1]
    h2 = params["mlp_hidden_w"].shape[1]

    # Padded dims: lane dims to 128, nodes to a multiple of 128, graphs to 8.
    np_ = _round_up(num_nodes, LANES)
    dp = _round_up(max(num_feats, hidden), LANES)
    h2p = _round_up(h2, LANES)
    gp = _round_up(num_graphs, SUBLANES)
    outp = LANES

    adj = normalized_adjacency(edge_index, num_nodes)
    pool = mean_pool_matrix(batch, num_graphs, num_nodes)

    adj_p = _pad2(adj, np_, np_).astype(jnp.bfloat16)
    x_p = _pad2(x, np_, dp).astype(jnp.bfloat16)
    pool_p = _pad2(pool, gp, np_).astype(jnp.bfloat16)

    # Fold GCNConv bias + eval-mode BN into weights, pad, stack along layers.
    w_list, s_list = [], []
    for conv, bn in zip(params["convs"], params["bns"]):
        w_fold, shift = _fold_conv_bn(conv["w"], conv["b"][0], bn)
        w_list.append(_pad2(w_fold, dp, dp).astype(jnp.bfloat16))
        s_list.append(jnp.pad(shift, (0, dp - shift.shape[0]))[None, :])
    w_stack = jnp.stack(w_list)                         # (L, Dp, Dp) bf16
    shift_stack = jnp.stack(s_list)                     # (L, 1, Dp) f32

    # Fold Linear bias + head BN; pad head params.
    w1_fold, shift1 = _fold_conv_bn(params["mlp_hidden_w"],
                                    params["mlp_hidden_b"][0],
                                    params["bn_head"])
    w1_p = _pad2(w1_fold, dp, h2p).astype(jnp.bfloat16)
    shift1_p = jnp.pad(shift1, (0, h2p - h2))[None, :]
    w2_p = _pad2(params["mlp_output_w"], h2p, outp).astype(jnp.bfloat16)
    b2_p = jnp.pad(params["mlp_output_b"], ((0, 0), (0, outp - 1)))

    out_p = fused_gcn_call(adj_p, x_p, w_stack, shift_stack, pool_p,
                           w1_p, shift1_p, w2_p, b2_p)
    return out_p[:num_graphs, :1]                       # (num_graphs, 1)


# ----------------------------------------------------------------------------
if __name__ == "__main__":
    NUM_NODES = 64
    NUM_NODE_FEATURES = 16
    HIDDEN = 32
    NUM_LAYERS = 3
    NUM_GRAPHS = 4
    NUM_EDGES = 128

    key = jax.random.PRNGKey(0)
    kx, ke, kp = jax.random.split(key, 3)

    x = jax.random.normal(kx, (NUM_NODES, NUM_NODE_FEATURES), jnp.float32)
    edge_index = jax.random.randint(ke, (2, NUM_EDGES), 0, NUM_NODES, jnp.int32)
    batch = jnp.repeat(jnp.arange(NUM_GRAPHS, dtype=jnp.int32),
                       NUM_NODES // NUM_GRAPHS)

    params = init_params(kp, NUM_NODE_FEATURES, HIDDEN, NUM_LAYERS)

    out = gcn_forward(params, x, edge_index, batch, NUM_GRAPHS)
    jax.block_until_ready(out)
    assert out.shape == (NUM_GRAPHS, 1)
    print("KERNEL_OK")
</pallas_src>

<mosaic_0001>
module attributes {stable_mosaic.version = 11 : i64} {
  func.func private @main(%arg0: i32) attributes {dimension_semantics = [#tpu.dimension_semantics<core_parallel>], iteration_bounds = array<i64: 2>, tpu.core_type = #tpu.core_type<sc_scalar_subcore>, window_params = []} {
    return
  }
}

module attributes {stable_mosaic.version = 11 : i64} {
  func.func private @main(%arg0: i32) attributes {dimension_semantics = [#tpu.dimension_semantics<core_parallel>], iteration_bounds = array<i64: 2>, tpu.core_type = #tpu.core_type<sc_scalar_subcore>, window_params = []} {
    return
  }
}

module attributes {stable_mosaic.version = 11 : i64} {
  func.func @fused_gcn_kernel(%arg0: memref<128x128xbf16, #tpu.memory_space<vmem>>, %arg1: memref<128x128xbf16, #tpu.memory_space<vmem>>, %arg2: memref<3x128x128xbf16, #tpu.memory_space<vmem>>, %arg3: memref<3x1x128xf32, #tpu.memory_space<vmem>>, %arg4: memref<8x128xbf16, #tpu.memory_space<vmem>>, %arg5: memref<128x128xbf16, #tpu.memory_space<vmem>>, %arg6: memref<1x128xf32, #tpu.memory_space<vmem>>, %arg7: memref<128x128xbf16, #tpu.memory_space<vmem>>, %arg8: memref<1x128xf32, #tpu.memory_space<vmem>>, %arg9: memref<8x128xf32, #tpu.memory_space<vmem>>) attributes {dimension_semantics = [], scalar_prefetch = 0 : i64, scratch_operands = 0 : i64, tpu.core_type = #tpu.core_type<tc>} {
    %c0 = arith.constant 0 : index
    %c0_0 = arith.constant 0 : index
    %0 = vector.load %arg0[%c0, %c0_0] : memref<128x128xbf16, #tpu.memory_space<vmem>>, vector<128x128xbf16>
    %c0_1 = arith.constant 0 : index
    %c0_2 = arith.constant 0 : index
    %1 = vector.load %arg1[%c0_1, %c0_2] : memref<128x128xbf16, #tpu.memory_space<vmem>>, vector<128x128xbf16>
    %c0_i32 = arith.constant 0 : i32
    %2 = arith.index_cast %c0_i32 : i32 to index
    %c0_3 = arith.constant 0 : index
    %c0_4 = arith.constant 0 : index
    %3 = vector.load %arg2[%2, %c0_3, %c0_4] : memref<3x128x128xbf16, #tpu.memory_space<vmem>>, vector<1x128x128xbf16>
    %4 = vector.shape_cast %3 : vector<1x128x128xbf16> to vector<128x128xbf16>
    %cst = arith.constant dense<0.000000e+00> : vector<128x128xf32>
    %5 = tpu.matmul %1, %4, %cst {dimension_numbers = #tpu.dot_dimension_numbers<[1], [0], [0], [1], [0, 0, 1, 1], [], []>} : vector<128x128xbf16>, vector<128x128xbf16>, vector<128x128xf32> -> vector<128x128xf32>
    %6 = arith.truncf %5 : vector<128x128xf32> to vector<128x128xbf16>
    %cst_5 = arith.constant dense<0.000000e+00> : vector<128x128xf32>
    %7 = tpu.matmul %0, %6, %cst_5 {dimension_numbers = #tpu.dot_dimension_numbers<[1], [0], [0], [1], [0, 0, 1, 1], [], []>} : vector<128x128xbf16>, vector<128x128xbf16>, vector<128x128xf32> -> vector<128x128xf32>
    %8 = arith.index_cast %c0_i32 : i32 to index
    %c0_6 = arith.constant 0 : index
    %c0_7 = arith.constant 0 : index
    %9 = vector.load %arg3[%8, %c0_6, %c0_7] : memref<3x1x128xf32, #tpu.memory_space<vmem>>, vector<1x1x128xf32>
    %10 = vector.shape_cast %9 : vector<1x1x128xf32> to vector<1x128xf32>
    %11 = vector.broadcast %10 : vector<1x128xf32> to vector<128x128xf32>
    %12 = arith.addf %7, %11 : vector<128x128xf32>
    %cst_8 = arith.constant 0.000000e+00 : f32
    %13 = vector.broadcast %cst_8 : f32 to vector<128x128xf32>
    %14 = arith.maximumf %12, %13 : vector<128x128xf32>
    %15 = arith.truncf %14 : vector<128x128xf32> to vector<128x128xbf16>
    %c1_i32 = arith.constant 1 : i32
    %16 = arith.index_cast %c1_i32 : i32 to index
    %c0_9 = arith.constant 0 : index
    %c0_10 = arith.constant 0 : index
    %17 = vector.load %arg2[%16, %c0_9, %c0_10] : memref<3x128x128xbf16, #tpu.memory_space<vmem>>, vector<1x128x128xbf16>
    %18 = vector.shape_cast %17 : vector<1x128x128xbf16> to vector<128x128xbf16>
    %cst_11 = arith.constant dense<0.000000e+00> : vector<128x128xf32>
    %19 = tpu.matmul %15, %18, %cst_11 {dimension_numbers = #tpu.dot_dimension_numbers<[1], [0], [0], [1], [0, 0, 1, 1], [], []>} : vector<128x128xbf16>, vector<128x128xbf16>, vector<128x128xf32> -> vector<128x128xf32>
    %20 = arith.truncf %19 : vector<128x128xf32> to vector<128x128xbf16>
    %cst_12 = arith.constant dense<0.000000e+00> : vector<128x128xf32>
    %21 = tpu.matmul %0, %20, %cst_12 {dimension_numbers = #tpu.dot_dimension_numbers<[1], [0], [0], [1], [0, 0, 1, 1], [], []>} : vector<128x128xbf16>, vector<128x128xbf16>, vector<128x128xf32> -> vector<128x128xf32>
    %22 = arith.index_cast %c1_i32 : i32 to index
    %c0_13 = arith.constant 0 : index
    %c0_14 = arith.constant 0 : index
    %23 = vector.load %arg3[%22, %c0_13, %c0_14] : memref<3x1x128xf32, #tpu.memory_space<vmem>>, vector<1x1x128xf32>
    %24 = vector.shape_cast %23 : vector<1x1x128xf32> to vector<1x128xf32>
    %25 = vector.broadcast %24 : vector<1x128xf32> to vector<128x128xf32>
    %26 = arith.addf %21, %25 : vector<128x128xf32>
    %cst_15 = arith.constant 0.000000e+00 : f32
    %27 = vector.broadcast %cst_15 : f32 to vector<128x128xf32>
    %28 = arith.maximumf %26, %27 : vector<128x128xf32>
    %29 = arith.truncf %28 : vector<128x128xf32> to vector<128x128xbf16>
    %c2_i32 = arith.constant 2 : i32
    %30 = arith.index_cast %c2_i32 : i32 to index
    %c0_16 = arith.constant 0 : index
    %c0_17 = arith.constant 0 : index
    %31 = vector.load %arg2[%30, %c0_16, %c0_17] : memref<3x128x128xbf16, #tpu.memory_space<vmem>>, vector<1x128x128xbf16>
    %32 = vector.shape_cast %31 : vector<1x128x128xbf16> to vector<128x128xbf16>
    %cst_18 = arith.constant dense<0.000000e+00> : vector<128x128xf32>
    %33 = tpu.matmul %29, %32, %cst_18 {dimension_numbers = #tpu.dot_dimension_numbers<[1], [0], [0], [1], [0, 0, 1, 1], [], []>} : vector<128x128xbf16>, vector<128x128xbf16>, vector<128x128xf32> -> vector<128x128xf32>
    %34 = arith.truncf %33 : vector<128x128xf32> to vector<128x128xbf16>
    %cst_19 = arith.constant dense<0.000000e+00> : vector<128x128xf32>
    %35 = tpu.matmul %0, %34, %cst_19 {dimension_numbers = #tpu.dot_dimension_numbers<[1], [0], [0], [1], [0, 0, 1, 1], [], []>} : vector<128x128xbf16>, vector<128x128xbf16>, vector<128x128xf32> -> vector<128x128xf32>
    %36 = arith.index_cast %c2_i32 : i32 to index
    %c0_20 = arith.constant 0 : index
    %c0_21 = arith.constant 0 : index
    %37 = vector.load %arg3[%36, %c0_20, %c0_21] : memref<3x1x128xf32, #tpu.memory_space<vmem>>, vector<1x1x128xf32>
    %38 = vector.shape_cast %37 : vector<1x1x128xf32> to vector<1x128xf32>
    %39 = vector.broadcast %38 : vector<1x128xf32> to vector<128x128xf32>
    %40 = arith.addf %35, %39 : vector<128x128xf32>
    %cst_22 = arith.constant 0.000000e+00 : f32
    %41 = vector.broadcast %cst_22 : f32 to vector<128x128xf32>
    %42 = arith.maximumf %40, %41 : vector<128x128xf32>
    %43 = arith.truncf %42 : vector<128x128xf32> to vector<128x128xbf16>
    %c3_i32 = arith.constant 3 : i32
    %c0_23 = arith.constant 0 : index
    %c0_24 = arith.constant 0 : index
    %44 = vector.load %arg4[%c0_23, %c0_24] : memref<8x128xbf16, #tpu.memory_space<vmem>>, vector<8x128xbf16>
    %cst_25 = arith.constant dense<0.000000e+00> : vector<8x128xf32>
    %45 = tpu.matmul %44, %43, %cst_25 {dimension_numbers = #tpu.dot_dimension_numbers<[1], [0], [0], [1], [0, 0, 1, 1], [], []>} : vector<8x128xbf16>, vector<128x128xbf16>, vector<8x128xf32> -> vector<8x128xf32>
    %46 = arith.truncf %45 : vector<8x128xf32> to vector<8x128xbf16>
    %c0_26 = arith.constant 0 : index
    %c0_27 = arith.constant 0 : index
    %47 = vector.load %arg5[%c0_26, %c0_27] : memref<128x128xbf16, #tpu.memory_space<vmem>>, vector<128x128xbf16>
    %cst_28 = arith.constant dense<0.000000e+00> : vector<8x128xf32>
    %48 = tpu.matmul %46, %47, %cst_28 {dimension_numbers = #tpu.dot_dimension_numbers<[1], [0], [0], [1], [0, 0, 1, 1], [], []>} : vector<8x128xbf16>, vector<128x128xbf16>, vector<8x128xf32> -> vector<8x128xf32>
    %c0_29 = arith.constant 0 : index
    %c0_30 = arith.constant 0 : index
    %49 = vector.load %arg6[%c0_29, %c0_30] : memref<1x128xf32, #tpu.memory_space<vmem>>, vector<1x128xf32>
    %50 = vector.broadcast %49 : vector<1x128xf32> to vector<8x128xf32>
    %51 = arith.addf %48, %50 : vector<8x128xf32>
    %cst_31 = arith.constant 0.000000e+00 : f32
    %52 = vector.broadcast %cst_31 : f32 to vector<8x128xf32>
    %53 = arith.maximumf %51, %52 : vector<8x128xf32>
    %54 = arith.truncf %53 : vector<8x128xf32> to vector<8x128xbf16>
    %c0_32 = arith.constant 0 : index
    %c0_33 = arith.constant 0 : index
    %55 = vector.load %arg7[%c0_32, %c0_33] : memref<128x128xbf16, #tpu.memory_space<vmem>>, vector<128x128xbf16>
    %cst_34 = arith.constant dense<0.000000e+00> : vector<8x128xf32>
    %56 = tpu.matmul %54, %55, %cst_34 {dimension_numbers = #tpu.dot_dimension_numbers<[1], [0], [0], [1], [0, 0, 1, 1], [], []>} : vector<8x128xbf16>, vector<128x128xbf16>, vector<8x128xf32> -> vector<8x128xf32>
    %c0_35 = arith.constant 0 : index
    %c0_36 = arith.constant 0 : index
    %57 = vector.load %arg8[%c0_35, %c0_36] : memref<1x128xf32, #tpu.memory_space<vmem>>, vector<1x128xf32>
    %58 = vector.broadcast %57 : vector<1x128xf32> to vector<8x128xf32>
    %59 = arith.addf %56, %58 : vector<8x128xf32>
    %c0_37 = arith.constant 0 : index
    %c0_38 = arith.constant 0 : index
    %60 = vector.load %arg9[%c0_37, %c0_38] : memref<8x128xf32, #tpu.memory_space<vmem>>, vector<8x128xf32>
    tpu.vector_store %arg9[%c0_37, %c0_38], %59 {strides = array<i32>} : memref<8x128xf32, #tpu.memory_space<vmem>>, vector<8x128xf32>,
    return
  }
}

</mosaic_0001>

<bundles_post_ra>
// kernel: gcn_forward.1
= control target key start
LH: loop header
LB: loop body
LE: loop exit
PB: predicated region body
PF: predicated region fallthrough
CT: control target
= control target key end

     0   :  { %vm1856_vm0 = vmmov 0   ;;  %s2166_s2 = inlined_call_operand.vmem [shape: bf16[3,128,128], index: 2, kind: input, shape index: {}]   ;;  %s2167_s1 = inlined_call_operand.vmem [shape: bf16[128,128], index: 1, kind: input, shape index: {}]   ;;  %s2168_s0 = inlined_call_operand.vmem [shape: bf16[128,128], index: 0, kind: input, shape index: {}]   ;;  %s2169_s3 = inlined_call_operand.vmem [shape: f32[3,1,128], index: 3, kind: input, shape index: {}]   ;;  %s2170_s5 = inlined_call_operand.vmem [shape: bf16[128,128], index: 5, kind: input, shape index: {}]   ;;  %s2171_s4 = inlined_call_operand.vmem [shape: bf16[8,128], index: 4, kind: input, shape index: {}]   ;;  %s2172_s7 = inlined_call_operand.vmem [shape: bf16[128,128], index: 7, kind: input, shape index: {}]   ;;  %s2173_s6 = inlined_call_operand.vmem [shape: f32[1,128], index: 6, kind: input, shape index: {}]   ;;  %s2174_s8 = inlined_call_operand.vmem [shape: f32[1,128], index: 8, kind: input, shape index: {}]   ;;  %s2175_s9 = inlined_call_operand.vmem [shape: f32[8,128], index: 9, kind: output, shape index: {}]  }
   0x1   :  { %v1799_v0 = vld [vmem:[%s2166_s2] sm:$0xff]   ;;  %v1800_v1 = vld [vmem:[%s2166_s2 + $0x8] sm:$0xff]   ;;  %v1801_v2 = vld [vmem:[%s2166_s2 + $0x10] sm:$0xff]  }
   0x2   :  { %1545 = vmatprep.subr.bf16.mxu0 %v1799_v0  ;;  %v1802_v3 = vld [vmem:[%s2166_s2 + $0x18] sm:$0xff]   ;;  %v1807_v4 = vld [vmem:[%s2167_s1] sm:$0xff]   ;;  %v1804_v6 = vld [vmem:[%s2166_s2 + $0x28] sm:$0xff]  }
   0x3   :  { %1546 = vmatpush3.bf16.msra.mxu0 %v1799_v0  ;;  %1561 = vmatprep.mubr.bf16.mxu0 %v1807_v4  ;;  %v1803_v5 = vld [vmem:[%s2166_s2 + $0x20] sm:$0xff]   ;;  %v1805_v7 = vld [vmem:[%s2166_s2 + $0x30] sm:$0xff]   ;;  %v1806_v8 = vld [vmem:[%s2166_s2 + $0x38] sm:$0xff]  }
   0x4   :  { %1547 = vmatprep.subr.bf16.mxu0 %v1800_v1  ;;  %v1808_v9 = vld [vmem:[%s2167_s1 + $0x8] sm:$0xff]   ;;  %v1809_v10 = vld [vmem:[%s2167_s1 + $0x10] sm:$0xff]   ;;  %v1810_v11 = vld [vmem:[%s2167_s1 + $0x18] sm:$0xff]  }
   0x5   :  { %v1811_v12 = vld [vmem:[%s2167_s1 + $0x20] sm:$0xff]   ;;  %v1812_v13 = vld [vmem:[%s2167_s1 + $0x28] sm:$0xff]   ;;  %v1813_v14 = vld [vmem:[%s2167_s1 + $0x30] sm:$0xff]  }
   0x6   :  { %v1814_v15 = vld [vmem:[%s2167_s1 + $0x38] sm:$0xff]   ;;  %v1958_v16 = vld [vmem:[%s2168_s0] sm:$0xff]   ;;  %v1824_v18 = vld [vmem:[%s2166_s2 + $0x48] sm:$0xff]  }
   0x7   :  { %1548 = vmatpush3.bf16.msra.mxu0 %v1800_v1  ;;  %1593 = vmatprep.mubr.bf16.mxu1 %v1958_v16  ;;  %v1823_v17 = vld [vmem:[%s2166_s2 + $0x40] sm:$0xff]   ;;  %v1825_v19 = vld [vmem:[%s2166_s2 + $0x50] sm:$0xff]   ;;  %v1826_v20 = vld [vmem:[%s2166_s2 + $0x58] sm:$0xff]  }
   0x8   :  { %1549 = vmatprep.subr.bf16.mxu0 %v1801_v2  ;;  %v1827_v21 = vld [vmem:[%s2166_s2 + $0x60] sm:$0xff]   ;;  %v1828_v22 = vld [vmem:[%s2166_s2 + $0x68] sm:$0xff]   ;;  %v1987_v48 = vld [vmem:[%s2168_s0 + $0x10] sm:$0xff]  }
   0x9   :  { %v1982_v47 = vld [vmem:[%s2168_s0 + $0x8] sm:$0xff]   ;;  %v1994_v49 = vld [vmem:[%s2168_s0 + $0x18] sm:$0xff]   ;;  %v1999_v50 = vld [vmem:[%s2168_s0 + $0x20] sm:$0xff]  }
   0xa   :  { %v2006_v51 = vld [vmem:[%s2168_s0 + $0x28] sm:$0xff]   ;;  %v2011_v52 = vld [vmem:[%s2168_s0 + $0x30] sm:$0xff]   ;;  %v2018_v53 = vld [vmem:[%s2168_s0 + $0x38] sm:$0xff]  }
   0xb   :  { %1550 = vmatpush3.bf16.msra.mxu0 %v1801_v2  ;;  %v1829_v54 = vld [vmem:[%s2166_s2 + $0x70] sm:$0xff]   ;;  %v1830_v55 = vld [vmem:[%s2166_s2 + $0x78] sm:$0xff]   ;;  %v1343_v56 = vld [vmem:[%s2169_s3] ss:$0 sm:$0xff] }
   0xc   :  { %1551 = vmatprep.subr.bf16.mxu0 %v1802_v3 }
   0xf   :  { %1552 = vmatpush3.bf16.msra.mxu0 %v1802_v3 }
  0x10   :  { %1553 = vmatprep.subr.bf16.mxu0 %v1803_v5 }
  0x13   :  { %1554 = vmatpush3.bf16.msra.mxu0 %v1803_v5 }
  0x14   :  { %1555 = vmatprep.subr.bf16.mxu0 %v1804_v6 }
  0x17   :  { %1556 = vmatpush3.bf16.msra.mxu0 %v1804_v6 }
  0x18   :  { %1557 = vmatprep.subr.bf16.mxu0 %v1805_v7 }
  0x1b   :  { %1558 = vmatpush3.bf16.msra.mxu0 %v1805_v7 }
  0x1c   :  { %1559 = vmatprep.subr.bf16.mxu0 %v1806_v8 }
  0x1f   :  { %1560 = vmatpush3.bf16.msra.mxu0 %v1806_v8 }
  0x20   :  { %1609 = vmatprep.subr.bf16.mxu0 %v1823_v17 }
  0x22   :  { %1562 = vmatmul.mubr.bf16.vlgmr.msra.gmra.mrb[0].mxu0 %v1808_v9 }
  0x23   :  { %1565 = vmatprep.mubr.bf16.mxu0 %v1809_v10  ;;  %1610 = vmatpush3.bf16.msra.mxu0 %v1823_v17 }
  0x24   :  { %1611 = vmatprep.subr.bf16.mxu0 %v1824_v18 }
  0x27   :  { %1612 = vmatpush3.bf16.msra.mxu0 %v1824_v18 }
  0x28   :  { %1613 = vmatprep.subr.bf16.mxu0 %v1825_v19 }
  0x2a   :  { %1566 = vmatmul.mubr.bf16.gmra.mrb[4].mxu0 %v1810_v11 }
  0x2b   :  { %1569 = vmatprep.mubr.bf16.mxu0 %v1811_v12  ;;  %1614 = vmatpush3.bf16.msra.mxu0 %v1825_v19 }
  0x2c   :  { %1615 = vmatprep.subr.bf16.mxu0 %v1826_v20 }
  0x2f   :  { %1616 = vmatpush3.bf16.msra.mxu0 %v1826_v20 }
  0x30   :  { %1617 = vmatprep.subr.bf16.mxu0 %v1827_v21 }
  0x32   :  { %1570 = vmatmul.mubr.bf16.gmra.mrb[8].mxu0 %v1812_v13 }
  0x33   :  { %1573 = vmatprep.mubr.bf16.mxu0 %v1813_v14  ;;  %1618 = vmatpush3.bf16.msra.mxu0 %v1827_v21 }
  0x34   :  { %1619 = vmatprep.subr.bf16.mxu0 %v1828_v22 }
  0x37   :  { %1620 = vmatpush3.bf16.msra.mxu0 %v1828_v22 }
  0x38   :  { %1621 = vmatprep.subr.bf16.mxu0 %v1829_v54 }
  0x3a   :  { %1574 = vmatmul.mubr.bf16.gmra.mrb[12].mxu0 %v1814_v15 }
  0x3b   :  { %1622 = vmatpush3.bf16.msra.mxu0 %v1829_v54 }
  0x3c   :  { %1623 = vmatprep.subr.bf16.mxu0 %v1830_v55 }
  0x3f   :  { %1624 = vmatpush3.bf16.msra.mxu0 %v1830_v55 }
  0xf5   :  { %v1563_v23 = vpop.f32.mrb[0].mxu0 }
  0xf6   :  { %v211_v24 = vpop.f32.mrb[1].mxu0 }
  0xf7   :  { %v1564_v25 = vpop.f32.mrb[2].mxu0 }
  0xf8   :  { %v275_v26 = vpack.c.bf16 %v1564_v25, %v1563_v23  ;;  %v214_v27 = vpop.f32.mrb[3].mxu0 }
  0xf9   :  { %v274_v28 = vpack.c.bf16 %v214_v27, %v211_v24 }
  0xfb   :  { %1577 = vmatprep.subr.bf16.mxu1 %v274_v28 }
  0xfc   :  { %1578 = vmatpush3.bf16.msra.mxu1 %v274_v28 }
  0xfd   :  { %v1567_v29 = vpop.f32.mrb[4].mxu0  ;;  %1579 = vmatprep.subr.bf16.mxu1 %v275_v26 }
  0xfe   :  { %v227_v30 = vpop.f32.mrb[5].mxu0 }
  0xff   :  { %v1568_v31 = vpop.f32.mrb[6].mxu0 }
 0x100   :  { %v277_v32 = vpack.c.bf16 %v1568_v31, %v1567_v29  ;;  %v230_v33 = vpop.f32.mrb[7].mxu0  ;;  %1580 = vmatpush3.bf16.msra.mxu1 %v275_v26 }
 0x101   :  { %v276_v34 = vpack.c.bf16 %v230_v33, %v227_v30 }
 0x103   :  { %1581 = vmatprep.subr.bf16.mxu1 %v276_v34 }
 0x104   :  { %1582 = vmatpush3.bf16.msra.mxu1 %v276_v34 }
 0x105   :  { %v1571_v35 = vpop.f32.mrb[8].mxu0  ;;  %1583 = vmatprep.subr.bf16.mxu1 %v277_v32 }
 0x106   :  { %v243_v36 = vpop.f32.mrb[9].mxu0 }
 0x107   :  { %v1572_v37 = vpop.f32.mrb[10].mxu0 }
 0x108   :  { %v279_v38 = vpack.c.bf16 %v1572_v37, %v1571_v35  ;;  %v246_v39 = vpop.f32.mrb[11].mxu0  ;;  %1584 = vmatpush3.bf16.msra.mxu1 %v277_v32 }
 0x109   :  { %v278_v40 = vpack.c.bf16 %v246_v39, %v243_v36 }
 0x10b   :  { %1585 = vmatprep.subr.bf16.mxu1 %v278_v40 }
 0x10c   :  { %1586 = vmatpush3.bf16.msra.mxu1 %v278_v40 }
 0x10d   :  { %v1575_v41 = vpop.f32.mrb[12].mxu0  ;;  %1587 = vmatprep.subr.bf16.mxu1 %v279_v38 }
 0x10e   :  { %v259_v42 = vpop.f32.mrb[13].mxu0 }
 0x10f   :  { %v1576_v43 = vpop.f32.mrb[14].mxu0 }
 0x110   :  { %v281_v44 = vpack.c.bf16 %v1576_v43, %v1575_v41  ;;  %v262_v45 = vpop.f32.mrb[15].mxu0  ;;  %1588 = vmatpush3.bf16.msra.mxu1 %v279_v38 }
 0x111   :  { %v280_v46 = vpack.c.bf16 %v262_v45, %v259_v42 }
 0x113   :  { %1589 = vmatprep.subr.bf16.mxu1 %v280_v46 }
 0x114   :  { %1590 = vmatpush3.bf16.msra.mxu1 %v280_v46 }
 0x115   :  { %1591 = vmatprep.subr.bf16.mxu1 %v281_v44 }
 0x118   :  { %1592 = vmatpush3.bf16.msra.mxu1 %v281_v44 }
 0x11b   :  { %1594 = vmatmul.mubr.bf16.vlgmr.msra.gmra.mrb[0].mxu1 %v1982_v47 }
 0x11c   :  { %1597 = vmatprep.mubr.bf16.mxu1 %v1987_v48 }
 0x123   :  { %1598 = vmatmul.mubr.bf16.gmra.mrb[4].mxu1 %v1994_v49 }
 0x124   :  { %1601 = vmatprep.mubr.bf16.mxu1 %v1999_v50 }
 0x12b   :  { %1602 = vmatmul.mubr.bf16.gmra.mrb[8].mxu1 %v2006_v51 }
 0x12c   :  { %1605 = vmatprep.mubr.bf16.mxu1 %v2011_v52 }
 0x133   :  { %1606 = vmatmul.mubr.bf16.gmra.mrb[12].mxu1 %v2018_v53 }
 0x134   :  { %1657 = vmatprep.mubr.bf16.mxu1 %v1958_v16 }
 0x1ee   :  { %v1595_v57 = vpop.f32.mrb[0].mxu1 }
 0x1ef   :  { %v380_v58 = vadd.f32 %v1595_v57, %v1343_v56  ;;  %v371_v59 = vpop.f32.mrb[1].mxu1 }
 0x1f0   :  { %v372_v60 = vadd.f32 %v1343_v56, %v371_v59  ;;  %v1596_v61 = vpop.f32.mrb[2].mxu1  ;;  %v1832_v59 = vld [vmem:[%s2166_s2 + $0x88] sm:$0xff]  }
 0x1f1   :  { %v383_v62 = vadd.f32 %v1596_v61, %v1343_v56  ;;  %v374_v63 = vpop.f32.mrb[3].mxu1  ;;  %v436_v1 = vmax.f32 %v380_v58, 0.0  ;;  %v1831_v58 = vld [vmem:[%s2166_s2 + $0x80] sm:$0xff]  }
 0x1f2   :  { %v375_v0 = vadd.f32 %v1343_v56, %v374_v63  ;;  %v434_v3 = vmax.f32 %v372_v60, 0.0  ;;  %1673 = vmatprep.subr.bf16.mxu0 %v1831_v58  ;;  %v1834_v60 = vld [vmem:[%s2166_s2 + $0x98] sm:$0xff]   ;;  %v1835_v61 = vld [vmem:[%s2166_s2 + $0xa0] sm:$0xff]  }
 0x1f3   :  { %v437_v2 = vmax.f32 %v383_v62, 0.0  ;;  %v1836_v62 = vld [vmem:[%s2166_s2 + $0xa8] sm:$0xff]  }
 0x1f4   :  { %v435_v4 = vmax.f32 %v375_v0, 0.0 }
 0x1f5   :  { %v451_v5 = vpack.c.bf16 %v437_v2, %v436_v1 }
 0x1f6   :  { %v450_v6 = vpack.c.bf16 %v435_v4, %v434_v3  ;;  %v1599_v7 = vpop.f32.mrb[4].mxu1 }
 0x1f7   :  { %v396_v8 = vadd.f32 %v1599_v7, %v1343_v56  ;;  %v387_v9 = vpop.f32.mrb[5].mxu1 }
 0x1f8   :  { %v388_v10 = vadd.f32 %v1343_v56, %v387_v9  ;;  %v1600_v11 = vpop.f32.mrb[6].mxu1  ;;  %1625 = vmatprep.mubr.bf16.mxu0 %v450_v6 }
 0x1f9   :  { %v399_v12 = vadd.f32 %v1600_v11, %v1343_v56  ;;  %v390_v13 = vpop.f32.mrb[7].mxu1  ;;  %1626 = vmatmul.mubr.bf16.vlgmr.msra.gmra.mrb[16].mxu0 %v451_v5  ;;  %v440_v15 = vmax.f32 %v396_v8, 0.0 }
 0x1fa   :  { %v391_v14 = vadd.f32 %v1343_v56, %v390_v13  ;;  %v438_v18 = vmax.f32 %v388_v10, 0.0  ;;  %1674 = vmatpush3.bf16.msra.mxu0 %v1831_v58 }
 0x1fb   :  { %v441_v17 = vmax.f32 %v399_v12, 0.0  ;;  %1675 = vmatprep.subr.bf16.mxu0 %v1832_v59 }
 0x1fc   :  { %v439_v19 = vmax.f32 %v391_v14, 0.0 }
 0x1fd   :  { %v453_v20 = vpack.c.bf16 %v441_v17, %v440_v15 }
 0x1fe   :  { %v452_v21 = vpack.c.bf16 %v439_v19, %v438_v18  ;;  %v1603_v22 = vpop.f32.mrb[8].mxu1  ;;  %1676 = vmatpush3.bf16.msra.mxu0 %v1832_v59 }
 0x1ff   :  { %v412_v23 = vadd.f32 %v1603_v22, %v1343_v56  ;;  %v403_v24 = vpop.f32.mrb[9].mxu1 }
 0x200   :  { %v404_v25 = vadd.f32 %v1343_v56, %v403_v24  ;;  %v1604_v26 = vpop.f32.mrb[10].mxu1  ;;  %1629 = vmatprep.mubr.bf16.mxu0 %v452_v21  ;;  %v1837_v24 = vld [vmem:[%s2166_s2 + $0xb0] sm:$0xff]  }
 0x201   :  { %v415_v27 = vadd.f32 %v1604_v26, %v1343_v56  ;;  %v406_v28 = vpop.f32.mrb[11].mxu1  ;;  %1630 = vmatmul.mubr.bf16.gmra.mrb[20].mxu0 %v453_v20  ;;  %v444_v30 = vmax.f32 %v412_v23, 0.0  ;;  %v1377_v26 = vld [vmem:[%s2169_s3 + $0x1] ss:$0 sm:$0xff] }
 0x202   :  { %v407_v29 = vadd.f32 %v1343_v56, %v406_v28  ;;  %v442_v32 = vmax.f32 %v404_v25, 0.0  ;;  %v1838_v25 = vld [vmem:[%s2166_s2 + $0xb8] sm:$0xff]  }
 0x203   :  { %v445_v31 = vmax.f32 %v415_v27, 0.0 }
 0x204   :  { %v443_v33 = vmax.f32 %v407_v29, 0.0 }
 0x205   :  { %v455_v34 = vpack.c.bf16 %v445_v31, %v444_v30 }
 0x206   :  { %v454_v35 = vpack.c.bf16 %v443_v33, %v442_v32  ;;  %v1607_v36 = vpop.f32.mrb[12].mxu1 }
 0x207   :  { %v428_v37 = vadd.f32 %v1607_v36, %v1343_v56  ;;  %v419_v38 = vpop.f32.mrb[13].mxu1 }
 0x208   :  { %v420_v39 = vadd.f32 %v1343_v56, %v419_v38  ;;  %v1608_v40 = vpop.f32.mrb[14].mxu1  ;;  %1633 = vmatprep.mubr.bf16.mxu0 %v454_v35 }
 0x209   :  { %v431_v41 = vadd.f32 %v1608_v40, %v1343_v56  ;;  %v422_v42 = vpop.f32.mrb[15].mxu1  ;;  %1634 = vmatmul.mubr.bf16.gmra.mrb[24].mxu0 %v455_v34  ;;  %v448_v44 = vmax.f32 %v428_v37, 0.0 }
 0x20a   :  { %v423_v43 = vadd.f32 %v1343_v56, %v422_v42  ;;  %v446_v46 = vmax.f32 %v420_v39, 0.0  ;;  %v1833_v56 = vld [vmem:[%s2166_s2 + $0x90] sm:$0xff]  }
 0x20b   :  { %v449_v45 = vmax.f32 %v431_v41, 0.0  ;;  %1677 = vmatprep.subr.bf16.mxu0 %v1833_v56 }
 0x20c   :  { %v447_v54 = vmax.f32 %v423_v43, 0.0  ;;  %1678 = vmatpush3.bf16.msra.mxu0 %v1833_v56 }
 0x20d   :  { %v457_v55 = vpack.c.bf16 %v449_v45, %v448_v44  ;;  %1679 = vmatprep.subr.bf16.mxu0 %v1834_v60 }
 0x20e   :  { %v456_v57 = vpack.c.bf16 %v447_v54, %v446_v46 }
 0x210   :  { %1637 = vmatprep.mubr.bf16.mxu0 %v456_v57  ;;  %1680 = vmatpush3.bf16.msra.mxu0 %v1834_v60 }
 0x211   :  { %1638 = vmatmul.mubr.bf16.gmra.mrb[28].mxu0 %v457_v55  ;;  %1681 = vmatprep.subr.bf16.mxu0 %v1835_v61 }
 0x214   :  { %1682 = vmatpush3.bf16.msra.mxu0 %v1835_v61 }
 0x215   :  { %1683 = vmatprep.subr.bf16.mxu0 %v1836_v62 }
 0x218   :  { %1684 = vmatpush3.bf16.msra.mxu0 %v1836_v62 }
 0x219   :  { %1685 = vmatprep.subr.bf16.mxu0 %v1837_v24 }
 0x21c   :  { %1686 = vmatpush3.bf16.msra.mxu0 %v1837_v24 }
 0x21d   :  { %1687 = vmatprep.subr.bf16.mxu0 %v1838_v25 }
 0x220   :  { %1688 = vmatpush3.bf16.msra.mxu0 %v1838_v25 }
 0x2cc   :  { %v1627_v63 = vpop.f32.mrb[16].mxu0 }
 0x2cd   :  { %v557_v0 = vpop.f32.mrb[17].mxu0 }
 0x2ce   :  { %v1628_v1 = vpop.f32.mrb[18].mxu0 }
 0x2cf   :  { %v621_v2 = vpack.c.bf16 %v1628_v1, %v1627_v63  ;;  %v560_v3 = vpop.f32.mrb[19].mxu0 }
 0x2d0   :  { %v620_v4 = vpack.c.bf16 %v560_v3, %v557_v0 }
 0x2d2   :  { %1641 = vmatprep.subr.bf16.mxu1 %v620_v4 }
 0x2d3   :  { %1642 = vmatpush3.bf16.msra.mxu1 %v620_v4 }
 0x2d4   :  { %v1631_v5 = vpop.f32.mrb[20].mxu0  ;;  %1643 = vmatprep.subr.bf16.mxu1 %v621_v2 }
 0x2d5   :  { %v573_v6 = vpop.f32.mrb[21].mxu0 }
 0x2d6   :  { %v1632_v7 = vpop.f32.mrb[22].mxu0 }
 0x2d7   :  { %v623_v8 = vpack.c.bf16 %v1632_v7, %v1631_v5  ;;  %v576_v9 = vpop.f32.mrb[23].mxu0  ;;  %1644 = vmatpush3.bf16.msra.mxu1 %v621_v2 }
 0x2d8   :  { %v622_v10 = vpack.c.bf16 %v576_v9, %v573_v6 }
 0x2da   :  { %1645 = vmatprep.subr.bf16.mxu1 %v622_v10 }
 0x2db   :  { %1646 = vmatpush3.bf16.msra.mxu1 %v622_v10 }
 0x2dc   :  { %v1635_v11 = vpop.f32.mrb[24].mxu0  ;;  %1647 = vmatprep.subr.bf16.mxu1 %v623_v8 }
 0x2dd   :  { %v589_v12 = vpop.f32.mrb[25].mxu0 }
 0x2de   :  { %v1636_v13 = vpop.f32.mrb[26].mxu0 }
 0x2df   :  { %v625_v14 = vpack.c.bf16 %v1636_v13, %v1635_v11  ;;  %v592_v15 = vpop.f32.mrb[27].mxu0  ;;  %1648 = vmatpush3.bf16.msra.mxu1 %v623_v8 }
 0x2e0   :  { %v624_v17 = vpack.c.bf16 %v592_v15, %v589_v12 }
 0x2e2   :  { %1649 = vmatprep.subr.bf16.mxu1 %v624_v17 }
 0x2e3   :  { %1650 = vmatpush3.bf16.msra.mxu1 %v624_v17 }
 0x2e4   :  { %v1639_v18 = vpop.f32.mrb[28].mxu0  ;;  %1651 = vmatprep.subr.bf16.mxu1 %v625_v14 }
 0x2e5   :  { %v605_v19 = vpop.f32.mrb[29].mxu0 }
 0x2e6   :  { %v1640_v20 = vpop.f32.mrb[30].mxu0 }
 0x2e7   :  { %v627_v21 = vpack.c.bf16 %v1640_v20, %v1639_v18  ;;  %v608_v22 = vpop.f32.mrb[31].mxu0  ;;  %1652 = vmatpush3.bf16.msra.mxu1 %v625_v14 }
 0x2e8   :  { %v626_v23 = vpack.c.bf16 %v608_v22, %v605_v19 }
 0x2ea   :  { %1653 = vmatprep.subr.bf16.mxu1 %v626_v23 }
 0x2eb   :  { %1654 = vmatpush3.bf16.msra.mxu1 %v626_v23 }
 0x2ec   :  { %1655 = vmatprep.subr.bf16.mxu1 %v627_v21 }
 0x2ef   :  { %1656 = vmatpush3.bf16.msra.mxu1 %v627_v21 }
 0x2f2   :  { %1658 = vmatmul.mubr.bf16.vlgmr.msra.gmra.mrb[16].mxu1 %v1982_v47 }
 0x2f3   :  { %1661 = vmatprep.mubr.bf16.mxu1 %v1987_v48 }
 0x2fa   :  { %1662 = vmatmul.mubr.bf16.gmra.mrb[20].mxu1 %v1994_v49 }
 0x2fb   :  { %1665 = vmatprep.mubr.bf16.mxu1 %v1999_v50 }
 0x302   :  { %1666 = vmatmul.mubr.bf16.gmra.mrb[24].mxu1 %v2006_v51 }
 0x303   :  { %1669 = vmatprep.mubr.bf16.mxu1 %v2011_v52 }
 0x30a   :  { %1670 = vmatmul.mubr.bf16.gmra.mrb[28].mxu1 %v2018_v53 }
 0x30b   :  { %1721 = vmatprep.mubr.bf16.mxu1 %v1958_v16 }
 0x3c5   :  { %v1659_v27 = vpop.f32.mrb[16].mxu1 }
 0x3c6   :  { %v679_v28 = vadd.f32 %v1659_v27, %v1377_v26  ;;  %v670_v29 = vpop.f32.mrb[17].mxu1 }
 0x3c7   :  { %v671_v16 = vadd.f32 %v1377_v26, %v670_v29  ;;  %v1660_v30 = vpop.f32.mrb[18].mxu1 }
 0x3c8   :  { %v682_v31 = vadd.f32 %v1660_v30, %v1377_v26  ;;  %v673_v32 = vpop.f32.mrb[19].mxu1  ;;  %v735_v34 = vmax.f32 %v679_v28, 0.0 }
 0x3c9   :  { %v674_v33 = vadd.f32 %v1377_v26, %v673_v32  ;;  %v733_v36 = vmax.f32 %v671_v16, 0.0 }
 0x3ca   :  { %v736_v35 = vmax.f32 %v682_v31, 0.0 }
 0x3cb   :  { %v734_v37 = vmax.f32 %v674_v33, 0.0 }
 0x3cc   :  { %v750_v38 = vpack.c.bf16 %v736_v35, %v735_v34 }
 0x3cd   :  { %v749_v39 = vpack.c.bf16 %v734_v37, %v733_v36  ;;  %v1663_v40 = vpop.f32.mrb[20].mxu1 }
 0x3ce   :  { %v695_v41 = vadd.f32 %v1663_v40, %v1377_v26  ;;  %v686_v42 = vpop.f32.mrb[21].mxu1 }
 0x3cf   :  { %v687_v43 = vadd.f32 %v1377_v26, %v686_v42  ;;  %v1664_v44 = vpop.f32.mrb[22].mxu1  ;;  %1689 = vmatprep.mubr.bf16.mxu0 %v749_v39 }
 0x3d0   :  { %v698_v45 = vadd.f32 %v1664_v44, %v1377_v26  ;;  %v689_v46 = vpop.f32.mrb[23].mxu1  ;;  %1690 = vmatmul.mubr.bf16.vlgmr.msra.gmra.mrb[32].mxu0 %v750_v38  ;;  %v739_v55 = vmax.f32 %v695_v41, 0.0 }
 0x3d1   :  { %v690_v54 = vadd.f32 %v1377_v26, %v689_v46  ;;  %v737_v58 = vmax.f32 %v687_v43, 0.0 }
 0x3d2   :  { %v740_v57 = vmax.f32 %v698_v45, 0.0 }
 0x3d3   :  { %v738_v59 = vmax.f32 %v690_v54, 0.0 }
 0x3d4   :  { %v752_v56 = vpack.c.bf16 %v740_v57, %v739_v55  ;;  %v1855_v57 = vmov 0.0  }
 0x3d5   :  { %v751_v60 = vpack.c.bf16 %v738_v59, %v737_v58  ;;  %v1667_v61 = vpop.f32.mrb[24].mxu1  ;;  %1737 = vmatprep.subr.bf16.mxu0 %v1855_v57  ;;  %v1403_v58 = vld [vmem:[%s2169_s3 + $0x2] ss:$0 sm:$0xff] }
 0x3d6   :  { %v711_v62 = vadd.f32 %v1667_v61, %v1377_v26  ;;  %v702_v63 = vpop.f32.mrb[25].mxu1 }
 0x3d7   :  { %v703_v0 = vadd.f32 %v1377_v26, %v702_v63  ;;  %v1668_v1 = vpop.f32.mrb[26].mxu1  ;;  %1693 = vmatprep.mubr.bf16.mxu0 %v751_v60 }
 0x3d8   :  { %v714_v2 = vadd.f32 %v1668_v1, %v1377_v26  ;;  %v705_v3 = vpop.f32.mrb[27].mxu1  ;;  %1694 = vmatmul.mubr.bf16.gmra.mrb[36].mxu0 %v752_v56  ;;  %v743_v5 = vmax.f32 %v711_v62, 0.0 }
 0x3d9   :  { %v706_v4 = vadd.f32 %v1377_v26, %v705_v3  ;;  %v741_v7 = vmax.f32 %v703_v0, 0.0 }
 0x3da   :  { %v744_v6 = vmax.f32 %v714_v2, 0.0 }
 0x3db   :  { %v742_v8 = vmax.f32 %v706_v4, 0.0 }
 0x3dc   :  { %v754_v9 = vpack.c.bf16 %v744_v6, %v743_v5 }
 0x3dd   :  { %v753_v10 = vpack.c.bf16 %v742_v8, %v741_v7  ;;  %v1671_v11 = vpop.f32.mrb[28].mxu1 }
 0x3de   :  { %v727_v12 = vadd.f32 %v1671_v11, %v1377_v26  ;;  %v718_v13 = vpop.f32.mrb[29].mxu1 }
 0x3df   :  { %v719_v14 = vadd.f32 %v1377_v26, %v718_v13  ;;  %v1672_v15 = vpop.f32.mrb[30].mxu1  ;;  %1697 = vmatprep.mubr.bf16.mxu0 %v753_v10 }
 0x3e0   :  { %v730_v17 = vadd.f32 %v1672_v15, %v1377_v26  ;;  %v721_v18 = vpop.f32.mrb[31].mxu1  ;;  %1698 = vmatmul.mubr.bf16.gmra.mrb[40].mxu0 %v754_v9  ;;  %v747_v20 = vmax.f32 %v727_v12, 0.0 }
 0x3e1   :  { %v722_v19 = vadd.f32 %v1377_v26, %v721_v18  ;;  %v745_v22 = vmax.f32 %v719_v14, 0.0 }
 0x3e2   :  { %v748_v21 = vmax.f32 %v730_v17, 0.0 }
 0x3e3   :  { %v746_v23 = vmax.f32 %v722_v19, 0.0 }
 0x3e4   :  { %v756_v24 = vpack.c.bf16 %v748_v21, %v747_v20 }
 0x3e5   :  { %v755_v25 = vpack.c.bf16 %v746_v23, %v745_v22 }
 0x3e7   :  { %1701 = vmatprep.mubr.bf16.mxu0 %v755_v25 }
 0x3e8   :  { %1702 = vmatmul.mubr.bf16.gmra.mrb[44].mxu0 %v756_v24 }
 0x3e9   :  { %1753 = vmatprep.mubr.msk.bf16.mxu0 %vm1856_vm0, %v1855_v57 }
 0x4a3   :  { %v1691_v27 = vpop.f32.mrb[32].mxu0 }
 0x4a4   :  { %v856_v28 = vpop.f32.mrb[33].mxu0 }
 0x4a5   :  { %v1692_v29 = vpop.f32.mrb[34].mxu0 }
 0x4a6   :  { %v920_v16 = vpack.c.bf16 %v1692_v29, %v1691_v27  ;;  %v859_v30 = vpop.f32.mrb[35].mxu0 }
 0x4a7   :  { %v919_v31 = vpack.c.bf16 %v859_v30, %v856_v28 }
 0x4a9   :  { %1705 = vmatprep.subr.bf16.mxu1 %v919_v31 }
 0x4aa   :  { %1706 = vmatpush3.bf16.msra.mxu1 %v919_v31 }
 0x4ab   :  { %v1695_v32 = vpop.f32.mrb[36].mxu0  ;;  %1707 = vmatprep.subr.bf16.mxu1 %v920_v16 }
 0x4ac   :  { %v872_v33 = vpop.f32.mrb[37].mxu0 }
 0x4ad   :  { %v1696_v26 = vpop.f32.mrb[38].mxu0 }
 0x4ae   :  { %v922_v34 = vpack.c.bf16 %v1696_v26, %v1695_v32  ;;  %v875_v35 = vpop.f32.mrb[39].mxu0  ;;  %1708 = vmatpush3.bf16.msra.mxu1 %v920_v16 }
 0x4af   :  { %v921_v36 = vpack.c.bf16 %v875_v35, %v872_v33 }
 0x4b1   :  { %1709 = vmatprep.subr.bf16.mxu1 %v921_v36 }
 0x4b2   :  { %1710 = vmatpush3.bf16.msra.mxu1 %v921_v36 }
 0x4b3   :  { %v1699_v37 = vpop.f32.mrb[40].mxu0  ;;  %1711 = vmatprep.subr.bf16.mxu1 %v922_v34 }
 0x4b4   :  { %v888_v38 = vpop.f32.mrb[41].mxu0 }
 0x4b5   :  { %v1700_v39 = vpop.f32.mrb[42].mxu0 }
 0x4b6   :  { %v924_v40 = vpack.c.bf16 %v1700_v39, %v1699_v37  ;;  %v891_v41 = vpop.f32.mrb[43].mxu0  ;;  %1712 = vmatpush3.bf16.msra.mxu1 %v922_v34 }
 0x4b7   :  { %v923_v42 = vpack.c.bf16 %v891_v41, %v888_v38 }
 0x4b9   :  { %1713 = vmatprep.subr.bf16.mxu1 %v923_v42 }
 0x4ba   :  { %1714 = vmatpush3.bf16.msra.mxu1 %v923_v42 }
 0x4bb   :  { %v1703_v43 = vpop.f32.mrb[44].mxu0  ;;  %1715 = vmatprep.subr.bf16.mxu1 %v924_v40 }
 0x4bc   :  { %v904_v44 = vpop.f32.mrb[45].mxu0 }
 0x4bd   :  { %v1704_v45 = vpop.f32.mrb[46].mxu0 }
 0x4be   :  { %v926_v46 = vpack.c.bf16 %v1704_v45, %v1703_v43  ;;  %v907_v54 = vpop.f32.mrb[47].mxu0  ;;  %1716 = vmatpush3.bf16.msra.mxu1 %v924_v40 }
 0x4bf   :  { %v925_v55 = vpack.c.bf16 %v907_v54, %v904_v44 }
 0x4c1   :  { %1717 = vmatprep.subr.bf16.mxu1 %v925_v55 }
 0x4c2   :  { %1718 = vmatpush3.bf16.msra.mxu1 %v925_v55 }
 0x4c3   :  { %1719 = vmatprep.subr.bf16.mxu1 %v926_v46 }
 0x4c6   :  { %1720 = vmatpush3.bf16.msra.mxu1 %v926_v46 }
 0x4c7   :  { %1757 = vmatprep.subr.bf16.mxu1 %v1855_v57 }
 0x4c9   :  { %1722 = vmatmul.mubr.bf16.vlgmr.msra.gmra.mrb[32].mxu1 %v1982_v47  ;;  %v1839_v47 = vld [vmem:[%s2170_s5] sm:$0xff]  }
 0x4ca   :  { %1725 = vmatprep.mubr.bf16.mxu1 %v1987_v48  ;;  %1758 = vmatpush3.bf16.msra.mxu1 %v1839_v47  ;;  %v1840_v48 = vld [vmem:[%s2170_s5 + $0x8] sm:$0xff]  }
 0x4cb   :  { %1759 = vmatprep.subr.bf16.mxu1 %v1855_v57 }
 0x4ce   :  { %1760 = vmatpush3.bf16.msra.mxu1 %v1840_v48  ;;  %v1056_v48 = vld [vmem:[%s2171_s4] sm:$0xf] }
 0x4cf   :  { %1761 = vmatprep.subr.bf16.mxu1 %v1855_v57 }
 0x4d1   :  { %1726 = vmatmul.mubr.bf16.gmra.mrb[36].mxu1 %v1994_v49  ;;  %v1841_v49 = vld [vmem:[%s2170_s5 + $0x10] sm:$0xff]  }
 0x4d2   :  { %1729 = vmatprep.mubr.bf16.mxu1 %v1999_v50  ;;  %1762 = vmatpush3.bf16.msra.mxu1 %v1841_v49  ;;  %v1842_v50 = vld [vmem:[%s2170_s5 + $0x18] sm:$0xff]  }
 0x4d3   :  { %1763 = vmatprep.subr.bf16.mxu1 %v1855_v57  ;;  %v1846_v49 = vld [vmem:[%s2170_s5 + $0x38] sm:$0xff]  }
 0x4d6   :  { %1764 = vmatpush3.bf16.msra.mxu1 %v1842_v50  ;;  %v1847_v50 = vld [vmem:[%s2172_s7] sm:$0xff]  }
 0x4d7   :  { %1765 = vmatprep.subr.bf16.mxu1 %v1855_v57 }
 0x4d9   :  { %1730 = vmatmul.mubr.bf16.gmra.mrb[40].mxu1 %v2006_v51  ;;  %v1843_v51 = vld [vmem:[%s2170_s5 + $0x20] sm:$0xff]  }
 0x4da   :  { %1733 = vmatprep.mubr.bf16.mxu1 %v2011_v52  ;;  %1766 = vmatpush3.bf16.msra.mxu1 %v1843_v51  ;;  %v1844_v52 = vld [vmem:[%s2170_s5 + $0x28] sm:$0xff]  }
 0x4db   :  { %1767 = vmatprep.subr.bf16.mxu1 %v1855_v57  ;;  %v1848_v51 = vld [vmem:[%s2172_s7 + $0x8] sm:$0xff]  }
 0x4de   :  { %1768 = vmatpush3.bf16.msra.mxu1 %v1844_v52  ;;  %v1849_v52 = vld [vmem:[%s2172_s7 + $0x10] sm:$0xff]  }
 0x4df   :  { %1769 = vmatprep.subr.bf16.mxu1 %v1855_v57 }
 0x4e1   :  { %1734 = vmatmul.mubr.bf16.gmra.mrb[44].mxu1 %v2018_v53  ;;  %v1845_v53 = vld [vmem:[%s2170_s5 + $0x30] sm:$0xff]  }
 0x4e2   :  { %1773 = vmatprep.mubr.msk.bf16.mxu1 %vm1856_vm0, %v1855_v57  ;;  %1770 = vmatpush3.bf16.msra.mxu1 %v1845_v53  ;;  %v1850_v53 = vld [vmem:[%s2172_s7 + $0x18] sm:$0xff]  }
 0x4e3   :  { %1771 = vmatprep.subr.bf16.mxu1 %v1855_v57 }
 0x4e6   :  { %1772 = vmatpush3.bf16.msra.mxu1 %v1846_v49 }
 0x59c   :  { %v1723_v59 = vpop.f32.mrb[32].mxu1 }
 0x59d   :  { %v978_v56 = vadd.f32 %v1723_v59, %v1403_v58  ;;  %v969_v60 = vpop.f32.mrb[33].mxu1  ;;  %v1852_v59 = vld [vmem:[%s2172_s7 + $0x28] sm:$0xff]  }
 0x59e   :  { %v970_v61 = vadd.f32 %v1403_v58, %v969_v60  ;;  %v1724_v62 = vpop.f32.mrb[34].mxu1 }
 0x59f   :  { %v981_v63 = vadd.f32 %v1724_v62, %v1403_v58  ;;  %v972_v0 = vpop.f32.mrb[35].mxu1  ;;  %v1034_v2 = vmax.f32 %v978_v56, 0.0 }
 0x5a0   :  { %v973_v1 = vadd.f32 %v1403_v58, %v972_v0  ;;  %v1032_v4 = vmax.f32 %v970_v61, 0.0  ;;  %v1853_v0 = vld [vmem:[%s2172_s7 + $0x30] sm:$0xff]  }
 0x5a1   :  { %v1035_v3 = vmax.f32 %v981_v63, 0.0 }
 0x5a2   :  { %v1033_v5 = vmax.f32 %v973_v1, 0.0  ;;  %v1854_v1 = vld [vmem:[%s2172_s7 + $0x38] sm:$0xff]  }
 0x5a3   :  { %v1049_v6 = vpack.c.bf16 %v1035_v3, %v1034_v2  ;;  %v1404_v2 = vld [vmem:[%s2173_s6] ss:$0 sm:$0xff] }
 0x5a4   :  { %v1048_v7 = vpack.c.bf16 %v1033_v5, %v1032_v4  ;;  %v1727_v8 = vpop.f32.mrb[36].mxu1 }
 0x5a5   :  { %v994_v9 = vadd.f32 %v1727_v8, %v1403_v58  ;;  %v985_v10 = vpop.f32.mrb[37].mxu1 }
 0x5a6   :  { %v986_v11 = vadd.f32 %v1403_v58, %v985_v10  ;;  %v1728_v12 = vpop.f32.mrb[38].mxu1  ;;  %1738 = vmatpush3.bf16.msra.mxu0 %v1048_v7 }
 0x5a7   :  { %v997_v13 = vadd.f32 %v1728_v12, %v1403_v58  ;;  %v988_v14 = vpop.f32.mrb[39].mxu1  ;;  %1739 = vmatprep.subr.bf16.mxu0 %v1855_v57  ;;  %v1038_v17 = vmax.f32 %v994_v9, 0.0 }
 0x5a8   :  { %v989_v15 = vadd.f32 %v1403_v58, %v988_v14  ;;  %v1036_v19 = vmax.f32 %v986_v11, 0.0 }
 0x5a9   :  { %v1039_v18 = vmax.f32 %v997_v13, 0.0 }
 0x5aa   :  { %v1037_v20 = vmax.f32 %v989_v15, 0.0  ;;  %1740 = vmatpush3.bf16.msra.mxu0 %v1049_v6 }
 0x5ab   :  { %v1051_v21 = vpack.c.bf16 %v1039_v18, %v1038_v17  ;;  %1741 = vmatprep.subr.bf16.mxu0 %v1855_v57 }
 0x5ac   :  { %v1050_v22 = vpack.c.bf16 %v1037_v20, %v1036_v19  ;;  %v1731_v23 = vpop.f32.mrb[40].mxu1 }
 0x5ad   :  { %v1010_v24 = vadd.f32 %v1731_v23, %v1403_v58  ;;  %v1001_v25 = vpop.f32.mrb[41].mxu1 }
 0x5ae   :  { %v1002_v27 = vadd.f32 %v1403_v58, %v1001_v25  ;;  %v1732_v28 = vpop.f32.mrb[42].mxu1  ;;  %1742 = vmatpush3.bf16.msra.mxu0 %v1050_v22 }
 0x5af   :  { %v1013_v29 = vadd.f32 %v1732_v28, %v1403_v58  ;;  %v1004_v16 = vpop.f32.mrb[43].mxu1  ;;  %1743 = vmatprep.subr.bf16.mxu0 %v1855_v57  ;;  %v1042_v31 = vmax.f32 %v1010_v24, 0.0 }
 0x5b0   :  { %v1005_v30 = vadd.f32 %v1403_v58, %v1004_v16  ;;  %v1040_v33 = vmax.f32 %v1002_v27, 0.0 }
 0x5b1   :  { %v1043_v32 = vmax.f32 %v1013_v29, 0.0 }
 0x5b2   :  { %v1041_v26 = vmax.f32 %v1005_v30, 0.0  ;;  %1744 = vmatpush3.bf16.msra.mxu0 %v1051_v21 }
 0x5b3   :  { %v1053_v34 = vpack.c.bf16 %v1043_v32, %v1042_v31  ;;  %1745 = vmatprep.subr.bf16.mxu0 %v1855_v57 }
 0x5b4   :  { %v1052_v35 = vpack.c.bf16 %v1041_v26, %v1040_v33  ;;  %v1735_v36 = vpop.f32.mrb[44].mxu1 }
 0x5b5   :  { %v1026_v37 = vadd.f32 %v1735_v36, %v1403_v58  ;;  %v1017_v38 = vpop.f32.mrb[45].mxu1 }
 0x5b6   :  { %v1018_v39 = vadd.f32 %v1403_v58, %v1017_v38  ;;  %v1736_v40 = vpop.f32.mrb[46].mxu1  ;;  %1746 = vmatpush3.bf16.msra.mxu0 %v1052_v35 }
 0x5b7   :  { %v1029_v41 = vadd.f32 %v1736_v40, %v1403_v58  ;;  %v1020_v42 = vpop.f32.mrb[47].mxu1  ;;  %1747 = vmatprep.subr.bf16.mxu0 %v1855_v57  ;;  %v1046_v44 = vmax.f32 %v1026_v37, 0.0 }
 0x5b8   :  { %v1021_v43 = vadd.f32 %v1403_v58, %v1020_v42  ;;  %v1044_v46 = vmax.f32 %v1018_v39, 0.0  ;;  %v1851_v58 = vld [vmem:[%s2172_s7 + $0x20] sm:$0xff]  }
 0x5b9   :  { %v1047_v45 = vmax.f32 %v1029_v41, 0.0 }
 0x5ba   :  { %v1045_v54 = vmax.f32 %v1021_v43, 0.0  ;;  %1748 = vmatpush3.bf16.msra.mxu0 %v1053_v34 }
 0x5bb   :  { %v1055_v55 = vpack.c.bf16 %v1047_v45, %v1046_v44  ;;  %1749 = vmatprep.subr.bf16.mxu0 %v1855_v57 }
 0x5bc   :  { %v1054_v47 = vpack.c.bf16 %v1045_v54, %v1044_v46 }
 0x5be   :  { %1750 = vmatpush3.bf16.msra.mxu0 %v1054_v47 }
 0x5bf   :  { %1751 = vmatprep.subr.bf16.mxu0 %v1855_v57 }
 0x5c2   :  { %1752 = vmatpush3.bf16.msra.mxu0 %v1055_v55 }
 0x5c3   :  { %1777 = vmatprep.subr.bf16.mxu0 %v1855_v57 }
 0x5c5   :  { %1754 = vmatmul.mubr.bf16.vlgmr.msra.gmra.mrb[48].mxu0 %v1056_v48 }
 0x5c6   :  { %1793 = vmatprep.mubr.msk.bf16.mxu0 %vm1856_vm0, %v1855_v57  ;;  %1778 = vmatpush3.bf16.msra.mxu0 %v1847_v50 }
 0x5c7   :  { %1779 = vmatprep.subr.bf16.mxu0 %v1855_v57 }
 0x5ca   :  { %1780 = vmatpush3.bf16.msra.mxu0 %v1848_v51 }
 0x5cb   :  { %1781 = vmatprep.subr.bf16.mxu0 %v1855_v57 }
 0x5ce   :  { %1782 = vmatpush3.bf16.msra.mxu0 %v1849_v52 }
 0x5cf   :  { %1783 = vmatprep.subr.bf16.mxu0 %v1855_v57 }
 0x5d2   :  { %1784 = vmatpush3.bf16.msra.mxu0 %v1850_v53 }
 0x5d3   :  { %1785 = vmatprep.subr.bf16.mxu0 %v1855_v57 }
 0x5d6   :  { %1786 = vmatpush3.bf16.msra.mxu0 %v1851_v58 }
 0x5d7   :  { %1787 = vmatprep.subr.bf16.mxu0 %v1855_v57 }
 0x5da   :  { %1788 = vmatpush3.bf16.msra.mxu0 %v1852_v59 }
 0x5db   :  { %1789 = vmatprep.subr.bf16.mxu0 %v1855_v57 }
 0x5de   :  { %1790 = vmatpush3.bf16.msra.mxu0 %v1853_v0 }
 0x5df   :  { %1791 = vmatprep.subr.bf16.mxu0 %v1855_v57  ;;  %v1413_v57 = vld [vmem:[%s2174_s8] ss:$0 sm:$0xff] }
 0x5e2   :  { %1792 = vmatpush3.bf16.msra.mxu0 %v1854_v1 }
 0x698   :  { %v1091_v56 = vpop.f32.mrb[48].mxu0 }
 0x699   :  { %v1097_v60 = vpack.c.bf16 %v1091_v56, %v1091_v56  ;;  %v1755_v61 = vpop.f32.mrb[49].mxu0 }
 0x69a   :  { %v1094_v62 = vpop.f32.mrb[50].mxu0 }
 0x69b   :  { %v1756_v63 = vpop.f32.mrb[51].mxu0  ;;  %1774 = vmatmul.mubr.bf16.vlgmr.msra.gmra.mrb[48].mxu1 %v1097_v60 }
 0x76e   :  { %v1203_v3 = vpop.f32.mrb[48].mxu1 }
 0x76f   :  { %v1204_v4 = vadd.f32 %v1404_v2, %v1203_v3  ;;  %v1775_v5 = vpop.f32.mrb[49].mxu1 }
 0x770   :  { %v1206_v6 = vpop.f32.mrb[50].mxu1 }
 0x771   :  { %v1209_v7 = vmax.f32 %v1204_v4, 0.0  ;;  %v1776_v8 = vpop.f32.mrb[51].mxu1 }
 0x773   :  { %v1210_v9 = vpack.c.bf16 %v1209_v7, %v1209_v7 }
 0x775   :  { %1794 = vmatmul.mubr.bf16.vlgmr.msra.gmra.mrb[52].mxu0 %v1210_v9 }
 0x848   :  { %v1316_v10 = vpop.f32.mrb[52].mxu0 }
 0x849   :  { %v1317_v11 = vadd.f32 %v1413_v57, %v1316_v10  ;;  %v1795_v12 = vpop.f32.mrb[53].mxu0 }
 0x84a   :  { %v1319_v13 = vpop.f32.mrb[54].mxu0 }
 0x84b   :  { %1322 = vst [vmem:[%s2175_s9] sm:$0xff] %v1317_v11  ;;  %v1796_v14 = vpop.f32.mrb[55].mxu0 }

</bundles_post_ra>
